<compile_context>
chip_gen: v5e
topology: v5e:2x2
jax: 0.10.0
libtpu: 0.0.40
codegen_flags: <defaults>
</compile_context>

<pallas_src>
import functools
import math

import jax
import jax.numpy as jnp
from jax import lax
from jax.experimental import pallas as pl
from jax.experimental.pallas import tpu as pltpu

LANE = 128
_BN_EPS = 1e-5


def two_layer_nn_kernel(x_ref, w1_ref, vec_ref, w2_ref, o_ref, *,
                        mxu_dtype, out_features):
    x = x_ref[...]                                               # [N, F] f32

    # ---- Linear 1 (bias omitted: cancelled exactly by BN mean subtraction) ----
    h = jnp.dot(x.astype(mxu_dtype), w1_ref[...],
                preferred_element_type=jnp.float32)              # [N, Hp] f32 acc

    # ---- packed per-feature vectors: row0=gamma, row1=beta, row2=b2 ----
    vecs = vec_ref[...]                                          # [3, Hp] f32
    gamma = vecs[0:1, :]                                         # [1, Hp]
    beta = vecs[1:2, :]                                          # [1, Hp]
    b2 = vecs[2:3, :out_features]                                # [1, F]

    # ---- BatchNorm1d, training mode; two-pass stats, fused FMA apply ----
    mean = jnp.mean(h, axis=0, keepdims=True)                    # [1, Hp]
    d = h - mean
    var = jnp.mean(d * d, axis=0, keepdims=True)                 # [1, Hp]
    scale = gamma * lax.rsqrt(var + _BN_EPS)                     # [1, Hp]
    h_bn = d * scale + beta                                      # single FMA pass

    # ---- GELU (exact erf, nn.GELU default) ----
    inv_sqrt2 = jnp.float32(0.7071067811865476)
    g = 0.5 * h_bn * (1.0 + lax.erf(h_bn * inv_sqrt2))

    # ---- Linear 2 + residual ----
    y = jnp.dot(g.astype(mxu_dtype), w2_ref[...],
                preferred_element_type=jnp.float32) + b2         # [N, F]
    o_ref[...] = (y + x).astype(o_ref.dtype)


def _round_up(v, m):
    return (v + m - 1) // m * m


def _pad_to(a, axis, target):
    pad = target - a.shape[axis]
    if pad == 0:
        return a
    widths = [(0, 0)] * a.ndim
    widths[axis] = (0, pad)
    return jnp.pad(a, widths)


def make_two_layer_nn(w1, b1, gamma, beta, w2, b2, *, mxu_dtype=jnp.bfloat16):
    """Build a jitted forward for TwoLayerNN.

    w1: [F, H]; b1/gamma/beta: [1, H]; w2: [H, F]; b2: [1, F] (out == in for
    the residual).  All parameter padding / packing / casting is done here,
    once; the returned forward(x) only launches the Pallas kernel.
    b1 is accepted for API parity with nn.Linear but is not used: training-mode
    BatchNorm's batch-mean subtraction cancels it exactly.
    """
    del b1  # cancelled by training-mode BatchNorm (see kernel comment)

    IN, HID = w1.shape
    HID2, OUT = w2.shape
    assert HID2 == HID and OUT == IN, "residual requires out_features == in_features"

    Hp = _round_up(HID, LANE)

    # Only the hidden LANE dim is padded (to 128); contraction dims stay as-is.
    # Invariant (documented + relied on): padded hidden columns of w1, padded
    # lanes of gamma/beta, and padded rows of w2 are all exactly zero, so the
    # padded hidden lanes stay 0 through Linear1 -> BN (scale=0, shift=0) ->
    # GELU(0)=0 -> contribute 0 through w2.
    w1p = _pad_to(w1, 1, Hp).astype(mxu_dtype)                   # [IN, Hp]
    w2p = _pad_to(w2, 0, Hp).astype(mxu_dtype)                   # [Hp, OUT]

    # Pack the three per-feature vectors into one operand (one DMA, not three).
    vecs = jnp.zeros((3, Hp), jnp.float32)
    vecs = vecs.at[0, :HID].set(gamma.reshape(-1))
    vecs = vecs.at[1, :HID].set(beta.reshape(-1))
    vecs = vecs.at[2, :OUT].set(b2.reshape(-1))

    kernel = functools.partial(two_layer_nn_kernel,
                               mxu_dtype=mxu_dtype, out_features=OUT)

    @jax.jit
    def forward(x):
        N, F = x.shape
        assert F == IN, "input feature dim mismatch"
        flops = 2 * N * (IN * HID + HID * OUT)
        bytes_accessed = (x.size * x.dtype.itemsize
                          + w1p.size * w1p.dtype.itemsize
                          + vecs.size * vecs.dtype.itemsize
                          + w2p.size * w2p.dtype.itemsize
                          + N * OUT * x.dtype.itemsize)
        return pl.pallas_call(
            kernel,
            out_shape=jax.ShapeDtypeStruct((N, OUT), x.dtype),
            # Tiny problem: full arrays resident in VMEM, single grid point
            # (full-batch BN stats need all rows together at this size).
            in_specs=[pl.BlockSpec(memory_space=pltpu.MemorySpace.VMEM)] * 4,
            out_specs=pl.BlockSpec(memory_space=pltpu.MemorySpace.VMEM),
            compiler_params=pltpu.CompilerParams(
                vmem_limit_bytes=32 * 1024 * 1024),
            cost_estimate=pl.CostEstimate(
                flops=flops, transcendentals=N * HID,
                bytes_accessed=bytes_accessed),
        )(x, w1p, vecs, w2p)

    return forward


def _reference(x, w1, b1, gamma, beta, w2, b2):
    # Faithful PyTorch-forward reference (keeps b1; BN training-mode stats).
    h = x @ w1 + b1
    mean = jnp.mean(h, axis=0, keepdims=True)
    var = jnp.mean((h - mean) ** 2, axis=0, keepdims=True)
    hn = (h - mean) / jnp.sqrt(var + _BN_EPS) * gamma + beta
    g = 0.5 * hn * (1.0 + lax.erf(hn / jnp.sqrt(2.0)))
    return g @ w2 + b2 + x


if __name__ == "__main__":
    key = jax.random.PRNGKey(0)
    N, IN, HID = 8, 32, 64      # out_features = in_features (residual)
    OUT = IN

    k_x, k_w1, k_b1, k_w2, k_b2 = jax.random.split(key, 5)

    x = jax.random.normal(k_x, (N, IN), dtype=jnp.float32)

    # nn.Linear init: U(-1/sqrt(fan_in), 1/sqrt(fan_in))
    lim1 = 1.0 / math.sqrt(IN)
    w1 = jax.random.uniform(k_w1, (IN, HID), jnp.float32, -lim1, lim1)
    b1 = jax.random.uniform(k_b1, (1, HID), jnp.float32, -lim1, lim1)
    lim2 = 1.0 / math.sqrt(HID)
    w2 = jax.random.uniform(k_w2, (HID, OUT), jnp.float32, -lim2, lim2)
    b2 = jax.random.uniform(k_b2, (1, OUT), jnp.float32, -lim2, lim2)

    # BatchNorm1d affine defaults: gamma=1, beta=0.
    gamma = jnp.ones((1, HID), jnp.float32)
    beta = jnp.zeros((1, HID), jnp.float32)

    ref = _reference(x, w1, b1, gamma, beta, w2, b2)

    # f32 MXU path: strict parity with the PyTorch-equivalent reference.
    fwd_f32 = make_two_layer_nn(w1, b1, gamma, beta, w2, b2,
                                mxu_dtype=jnp.float32)
    out = jax.block_until_ready(fwd_f32(x))
    assert out.shape == (N, OUT)
    assert jnp.allclose(out, ref, atol=1e-4, rtol=1e-4), "f32 path mismatch"

    # bf16-operand MXU path (default; recommended on v5e/v6e/v7x): loose tol.
    fwd_bf16 = make_two_layer_nn(w1, b1, gamma, beta, w2, b2)
    out_bf16 = jax.block_until_ready(fwd_bf16(x))
    assert out_bf16.shape == (N, OUT)
    assert jnp.allclose(out_bf16, ref, atol=5e-2, rtol=5e-2), "bf16 path mismatch"

    print("KERNEL_OK")
</pallas_src>

<mosaic_0001>
module attributes {stable_mosaic.version = 11 : i64} {
  func.func @two_layer_nn_kernel(%arg0: memref<8x32xf32, #tpu.memory_space<vmem>>, %arg1: memref<32x128xf32, #tpu.memory_space<vmem>>, %arg2: memref<3x128xf32, #tpu.memory_space<vmem>>, %arg3: memref<128x32xf32, #tpu.memory_space<vmem>>, %arg4: memref<8x32xf32, #tpu.memory_space<vmem>>) attributes {dimension_semantics = [], scalar_prefetch = 0 : i64, scratch_operands = 0 : i64, tpu.core_type = #tpu.core_type<tc>} {
    %c0 = arith.constant 0 : index
    %c0_0 = arith.constant 0 : index
    %0 = vector.load %arg0[%c0, %c0_0] : memref<8x32xf32, #tpu.memory_space<vmem>>, vector<8x32xf32>
    %c0_1 = arith.constant 0 : index
    %c0_2 = arith.constant 0 : index
    %1 = vector.load %arg1[%c0_1, %c0_2] : memref<32x128xf32, #tpu.memory_space<vmem>>, vector<32x128xf32>
    %cst = arith.constant dense<0.000000e+00> : vector<8x128xf32>
    %2 = tpu.matmul %0, %1, %cst {dimension_numbers = #tpu.dot_dimension_numbers<[1], [0], [0], [1], [0, 0, 1, 1], [], []>} : vector<8x32xf32>, vector<32x128xf32>, vector<8x128xf32> -> vector<8x128xf32>
    %c0_3 = arith.constant 0 : index
    %c0_4 = arith.constant 0 : index
    %3 = vector.load %arg2[%c0_3, %c0_4] : memref<3x128xf32, #tpu.memory_space<vmem>>, vector<3x128xf32>
    %4 = vector.extract_strided_slice %3 {offsets = [0, 0], sizes = [1, 128], strides = [1, 1]} : vector<3x128xf32> to vector<1x128xf32>
    %5 = vector.extract_strided_slice %3 {offsets = [1, 0], sizes = [1, 128], strides = [1, 1]} : vector<3x128xf32> to vector<1x128xf32>
    %6 = vector.extract_strided_slice %3 {offsets = [2, 0], sizes = [1, 32], strides = [1, 1]} : vector<3x128xf32> to vector<1x32xf32>
    %cst_5 = arith.constant dense<0.000000e+00> : vector<128xf32>
    %7 = vector.multi_reduction <add>, %2, %cst_5 [0] : vector<8x128xf32> to vector<128xf32>
    %8 = vector.shape_cast %7 : vector<128xf32> to vector<1x128xf32>
    %cst_6 = arith.constant 8.000000e+00 : f32
    %9 = vector.broadcast %cst_6 : f32 to vector<1x128xf32>
    %10 = arith.divf %8, %9 : vector<1x128xf32>
    %11 = vector.broadcast %10 : vector<1x128xf32> to vector<8x128xf32>
    %12 = arith.subf %2, %11 : vector<8x128xf32>
    %13 = arith.mulf %12, %12 : vector<8x128xf32>
    %cst_7 = arith.constant dense<0.000000e+00> : vector<128xf32>
    %14 = vector.multi_reduction <add>, %13, %cst_7 [0] : vector<8x128xf32> to vector<128xf32>
    %15 = vector.shape_cast %14 : vector<128xf32> to vector<1x128xf32>
    %cst_8 = arith.constant 8.000000e+00 : f32
    %16 = vector.broadcast %cst_8 : f32 to vector<1x128xf32>
    %17 = arith.divf %15, %16 : vector<1x128xf32>
    %cst_9 = arith.constant 9.99999974E-6 : f32
    %18 = vector.broadcast %cst_9 : f32 to vector<1x128xf32>
    %19 = arith.addf %17, %18 : vector<1x128xf32>
    %20 = math.rsqrt %19 : vector<1x128xf32>
    %21 = arith.mulf %4, %20 : vector<1x128xf32>
    %22 = vector.broadcast %21 : vector<1x128xf32> to vector<8x128xf32>
    %23 = arith.mulf %12, %22 : vector<8x128xf32>
    %24 = vector.broadcast %5 : vector<1x128xf32> to vector<8x128xf32>
    %25 = arith.addf %23, %24 : vector<8x128xf32>
    %cst_10 = arith.constant 5.000000e-01 : f32
    %26 = vector.broadcast %cst_10 : f32 to vector<8x128xf32>
    %27 = arith.mulf %26, %25 : vector<8x128xf32>
    %cst_11 = arith.constant 0.707106769 : f32
    %28 = vector.broadcast %cst_11 : f32 to vector<8x128xf32>
    %29 = arith.mulf %25, %28 : vector<8x128xf32>
    %30 = math.erf %29 : vector<8x128xf32>
    %cst_12 = arith.constant 1.000000e+00 : f32
    %31 = vector.broadcast %cst_12 : f32 to vector<8x128xf32>
    %32 = arith.addf %31, %30 : vector<8x128xf32>
    %33 = arith.mulf %27, %32 : vector<8x128xf32>
    %c0_13 = arith.constant 0 : index
    %c0_14 = arith.constant 0 : index
    %34 = vector.load %arg3[%c0_13, %c0_14] : memref<128x32xf32, #tpu.memory_space<vmem>>, vector<128x32xf32>
    %cst_15 = arith.constant dense<0.000000e+00> : vector<8x32xf32>
    %35 = tpu.matmul %33, %34, %cst_15 {dimension_numbers = #tpu.dot_dimension_numbers<[1], [0], [0], [1], [0, 0, 1, 1], [], []>} : vector<8x128xf32>, vector<128x32xf32>, vector<8x32xf32> -> vector<8x32xf32>
    %36 = vector.broadcast %6 : vector<1x32xf32> to vector<8x32xf32>
    %37 = arith.addf %35, %36 : vector<8x32xf32>
    %38 = arith.addf %37, %0 : vector<8x32xf32>
    %c0_16 = arith.constant 0 : index
    %c0_17 = arith.constant 0 : index
    %39 = vector.load %arg4[%c0_16, %c0_17] : memref<8x32xf32, #tpu.memory_space<vmem>>, vector<8x32xf32>
    tpu.vector_store %arg4[%c0_16, %c0_17], %38 {strides = array<i32>} : memref<8x32xf32, #tpu.memory_space<vmem>>, vector<8x32xf32>,
    return
  }
}

</mosaic_0001>

<bundles_post_ra>
// kernel: forward.1
= control target key start
LH: loop header
LB: loop body
LE: loop exit
PB: predicated region body
PF: predicated region fallthrough
CT: control target
= control target key end

     0   :  { %9 = vsyncpa [#allocation3], 0  ;;  %s451_s0 = inlined_call_operand.hbm [shape: f32[8,32], index: 0, kind: input, shape index: {}]   ;;  %s452_s1 = inlined_call_operand.hbm [shape: f32[32,128], index: 1, kind: input, shape index: {}]   ;;  %s453_s2 = inlined_call_operand.hbm [shape: f32[3,128], index: 2, kind: input, shape index: {}]   ;;  %s454_s3 = inlined_call_operand.hbm [shape: f32[128,32], index: 3, kind: input, shape index: {}]   ;;  %s455_s4 = inlined_call_operand.hbm [shape: f32[8,32], index: 4, kind: output, shape index: {}]  }
   0x1   :  { %10 = vsyncpa [#allocation6], 0 }
   0x2   :  { %11 = vsyncpa [#allocation9], 0  ;;  %s28_s17 = sshll.u32 %s452_s1, 4  ;;  %s29_s17 = int_to_ptr.hbm [resolvable:$true] %s28_s17 }
   0x3   :  { %12 = vsyncpa [#allocation4], 0  ;;  %s392_s18 = smov [#allocation5]   ;;  %s18_s22 = sshll.u32 %s451_s0, 4  ;;  %s19_s22 = int_to_ptr.hbm [resolvable:$true] %s18_s22 }
   0x4   :  { %s30_s19 = sshll.u32 %s392_s18, 4  ;;  %s393_s23 = smov 128   ;;  %s31_s19 = int_to_ptr.vmem [resolvable:$true] %s30_s19 }
   0x5   :  { %s394_s24 = smov 8   ;;  %s395_s25 = smov [#allocation2]  }
   0x6   :  { %36 = dma.hbm_to_vmem [thread:$0]  %s29_s17, 512, %s31_s19, [#allocation6], %s393_s23, %s393_s23, %s394_s24  }
   0x7   :  { %s20_s26 = sshll.u32 %s395_s25, 4  ;;  %s42_s29 = sshll.u32 %s453_s2, 4  ;;  %s21_s26 = int_to_ptr.vmem [resolvable:$true] %s20_s26  ;;  %s43_s29 = int_to_ptr.hbm [resolvable:$true] %s42_s29 }
   0x8   :  { %23 = dma.hbm_to_vmem [thread:$0]  %s19_s22, 128, %s21_s26, [#allocation3]  }
   0x9   :  { %s52_s5 = sshll.u32 %s454_s3, 4  ;;  %s396_s6 = smov [#allocation7]   ;;  %s53_s5 = int_to_ptr.hbm [resolvable:$true] %s52_s5 }
   0xa   :  { %s44_s7 = sshll.u32 %s396_s6, 4  ;;  %s397_s0 = smov [#allocation8]   ;;  %s45_s7 = int_to_ptr.vmem [resolvable:$true] %s44_s7 }
   0xb   :  { %47 = dma.hbm_to_vmem [thread:$0]  %s43_s29, 64, %s45_s7, [#allocation6]  }
   0xc   :  { %s54_s8 = sshll.u32 %s397_s0, 4  ;;  %s55_s8 = int_to_ptr.vmem [resolvable:$true] %s54_s8 }
   0xd   :  { %60 = dma.hbm_to_vmem [thread:$0]  %s53_s5, 2048, %s55_s8, [#allocation9], %s393_s23, %s393_s23, %s394_s24  }
   0xe   :  { %384 = dma.done.wait [#allocation3], 128  }
   0xf   :  { %385 = vsyncadd [#allocation3], 4294967168 }
  0x10   :  { %386 = dma.done.wait [#allocation6], 576  }
  0x11   :  { %387 = vsyncadd [#allocation6], 4294966720 }
  0x12   :  { %388 = dma.done.wait [#allocation9], 2048  }
  0x13   :  { %389 = vsyncadd [#allocation9], 4294965248  ;;  %v81_v0 = vld [vmem:[#allocation5 + $0x18] sm:$0xff]  ;;  %v80_v1 = vld [vmem:[#allocation5 + $0x10] sm:$0xff]  ;;  %vm82_vm0 = vcmask 261120   ;;  %v398_v5 = vmov 8.0  }
  0x14   :  { %98 = vmatpush.msra.mxu0 %v81_v0  ;;  %v79_v2 = vld [vmem:[#allocation5 + $0x8] sm:$0xff]  ;;  %v78_v3 = vld [vmem:[#allocation5] sm:$0xff]  ;;  %v437_v4 = vld [vmem:[#allocation2] sm:$0xff]  ;;  %258 = vrcp.f32 %v398_v5  ;;  %s399_s2 = smov [#allocation10]   ;;  %s236_s11 = sshll.u32 %s455_s4, 4  ;;  %s237_s11 = int_to_ptr.hbm [resolvable:$true] %s236_s11 }
  0x15   :  { %v205_v26 = vld [vmem:[#allocation8 + $0x78] sm:$0xff]  ;;  %v204_v27 = vld [vmem:[#allocation8 + $0x70] sm:$0xff]  ;;  %v203_v29 = vld [vmem:[#allocation8 + $0x68] sm:$0xff]  ;;  %s234_s3 = sshll.u32 %s399_s2, 4  ;;  %s235_s3 = int_to_ptr.vmem [resolvable:$true] %s234_s3 }
  0x16   :  { %99 = vmatpush.msra.mxu0 %v80_v1  ;;  %207 = vmatpush.msra.mxu1 %v205_v26  ;;  %v202_v31 = vld [vmem:[#allocation8 + $0x60] sm:$0xff]  ;;  %v201_v33 = vld [vmem:[#allocation8 + $0x58] sm:$0xff]  ;;  %v200_v35 = vld [vmem:[#allocation8 + $0x50] sm:$0xff] }
  0x17   :  { %v199_v36 = vld [vmem:[#allocation8 + $0x48] sm:$0xff]  ;;  %v198_v37 = vld [vmem:[#allocation8 + $0x40] sm:$0xff]  ;;  %v197_v38 = vld [vmem:[#allocation8 + $0x38] sm:$0xff] }
  0x18   :  { %100 = vmatpush.msra.mxu0 %v79_v2  ;;  %208 = vmatpush.msra.mxu1 %v204_v27  ;;  %v196_v40 = vld [vmem:[#allocation8 + $0x30] sm:$0xff]  ;;  %v195_v42 = vld [vmem:[#allocation8 + $0x28] sm:$0xff]  ;;  %v194_v44 = vld [vmem:[#allocation8 + $0x20] sm:$0xff] }
  0x19   :  { %v193_v46 = vld [vmem:[#allocation8 + $0x18] sm:$0xff]  ;;  %v192_v48 = vld [vmem:[#allocation8 + $0x10] sm:$0xff]  ;;  %v191_v51 = vld [vmem:[#allocation8 + $0x8] sm:$0xff] }
  0x1a   :  { %101 = vmatpush.msra.mxu0 %v78_v3  ;;  %v259_v6 = vpop.eup %258  ;;  %209 = vmatpush.msra.mxu1 %v203_v29  ;;  %v441_v49 = vld [vmem:[#allocation7] sm:$0x7]  ;;  %v190_v54 = vld [vmem:[#allocation8] sm:$0xff] }
  0x1b   :  { %248 = vmatmul.msk.f32.vlgmr.msra.gmra.mxu0 %vm82_vm0, %v437_v4  ;;  %v114_v7 = vmul.f32 8.0, %v259_v6  ;;  %vm118_vm1 = vweird.f32 %v259_v6  ;;  %v144_v56 = vperm.slane %v441_v49, 1 }
  0x1c   :  { %210 = vmatpush.msra.mxu1 %v202_v31 }
  0x1d   :  { %v115_v8 = vsub.f32 1.0, %v114_v7 }
  0x1e   :  { %211 = vmatpush.msra.mxu1 %v201_v33 }
  0x1f   :  { %v116_v11 = vmul.f32 %v259_v6, %v115_v8 }
  0x20   :  { %212 = vmatpush.msra.mxu1 %v200_v35  ;;  %v206_v35 = vperm.slane %v441_v49, 2 }
  0x21   :  { %v117_v14 = vadd.f32 %v259_v6, %v116_v11 }
  0x22   :  { %213 = vmatpush.msra.mxu1 %v199_v36 }
  0x23   :  { %v119_v17 = vsel %vm118_vm1, %v259_v6, %v117_v14 }
  0x24   :  { %214 = vmatpush.msra.mxu1 %v198_v37 }
  0x26   :  { %215 = vmatpush.msra.mxu1 %v197_v38 }
  0x28   :  { %216 = vmatpush.msra.mxu1 %v196_v40 }
  0x2a   :  { %217 = vmatpush.msra.mxu1 %v195_v42 }
  0x2c   :  { %218 = vmatpush.msra.mxu1 %v194_v44 }
  0x2e   :  { %219 = vmatpush.msra.mxu1 %v193_v46 }
  0x30   :  { %220 = vmatpush.msra.mxu1 %v192_v48 }
  0x32   :  { %221 = vmatpush.msra.mxu1 %v191_v51 }
  0x34   :  { %222 = vmatpush.msra.mxu1 %v190_v54 }
  0x98   :  { %v103_v9 = vpop.f32.mrf.mxu0 }
  0x99   :  { %v107_v10 = vrot.slane %v103_v9, 4 }
  0x9b   :  { %v108_v12 = vadd.f32 %v107_v10, %v103_v9 }
  0x9d   :  { %v109_v13 = vrot.slane %v108_v12, 2 }
  0x9f   :  { %v110_v15 = vadd.f32 %v109_v13, %v108_v12 }
  0xa1   :  { %v111_v16 = vrot.slane %v110_v15, 1 }
  0xa3   :  { %v112_v18 = vadd.f32 %v111_v16, %v110_v15 }
  0xa5   :  { %v120_v19 = vmul.f32 %v119_v17, %v112_v18 }
  0xa7   :  { %v121_v20 = vsub.f32 %v103_v9, %v120_v19 }
  0xa9   :  { %v122_v21 = vmul.f32 %v121_v20, %v121_v20 }
  0xab   :  { %v123_v22 = vrot.slane %v122_v21, 4 }
  0xad   :  { %v124_v23 = vadd.f32 %v123_v22, %v122_v21 }
  0xaf   :  { %v125_v24 = vrot.slane %v124_v23, 2 }
  0xb1   :  { %v126_v25 = vadd.f32 %v125_v24, %v124_v23 }
  0xb3   :  { %v127_v28 = vrot.slane %v126_v25, 1 }
  0xb5   :  { %v128_v30 = vadd.f32 %v127_v28, %v126_v25 }
  0xb7   :  { %v129_v32 = vmul.f32 %v128_v30, %v119_v17 }
  0xb9   :  { %v130_v34 = vadd.f32 1e-05, %v129_v32 }
  0xbb   :  { %260 = vrsqrt.f32 %v130_v34  ;;  %vm137_vm3 = vweird.f32 %v130_v34 }
  0xc1   :  { %v261_v39 = vpop.eup %260 }
  0xc2   :  { %v132_v41 = vmul.f32 %v261_v39, %v130_v34  ;;  %vm138_vm2 = vweird.f32 %v261_v39 }
  0xc3   :  { %vm139_vm4 = vmor %vm137_vm3, %vm138_vm2 }
  0xc4   :  { %v133_v43 = vmul.f32 %v261_v39, %v132_v41 }
  0xc6   :  { %v134_v45 = vmul.f32 0.5, %v133_v43 }
  0xc8   :  { %v135_v47 = vsub.f32 1.5, %v134_v45 }
  0xca   :  { %v136_v50 = vmul.f32 %v261_v39, %v135_v47 }
  0xcc   :  { %v140_v52 = vsel %vm139_vm4, %v261_v39, %v136_v50 }
  0xcd   :  { %v141_v53 = vmul.f32 %v140_v52, %v441_v49 }
  0xcf   :  { %v142_v55 = vperm.slane %v141_v53, 0 }
  0xd1   :  { %v143_v57 = vmul.f32 %v142_v55, %v121_v20 }
  0xd3   :  { %v145_v58 = vadd.f32 %v144_v56, %v143_v57 }
  0xd5   :  { %v147_v59 = vmul.f32 0.70710677, %v145_v58  ;;  %v146_v32 = vmul.f32 0.5, %v145_v58 }
  0xd7   :  { %v148_v60 = vmul.f32 %v147_v59, %v147_v59 }
  0xd9   :  { %v149_v61 = vmin.f32 %v148_v60, 16.0 }
  0xdb   :  { %v150_v62 = vmul.f32 2.1237322e-06, %v149_v61  ;;  %v161_v63 = vmul.f32 3.8918573e-05, %v149_v61 }
  0xdd   :  { %v151_v0 = vadd.f32 0.00028619796, %v150_v62  ;;  %v162_v1 = vadd.f32 0.001143296, %v161_v63 }
  0xdf   :  { %v152_v2 = vmul.f32 %v151_v0, %v149_v61  ;;  %v163_v3 = vmul.f32 %v162_v1, %v149_v61 }
  0xe1   :  { %v164_v5 = vadd.f32 0.014752088, %v163_v3  ;;  %v153_v6 = vadd.f32 0.0036580483, %v152_v2 }
  0xe3   :  { %v165_v7 = vmul.f32 %v164_v5, %v149_v61  ;;  %v154_v9 = vmul.f32 %v153_v6, %v149_v61 }
  0xe5   :  { %v166_v8 = vadd.f32 0.112945676, %v165_v7  ;;  %v155_v12 = vadd.f32 0.05243302, %v154_v9 }
  0xe7   :  { %v167_v10 = vmul.f32 %v166_v8, %v149_v61  ;;  %v156_v15 = vmul.f32 %v155_v12, %v149_v61 }
  0xe9   :  { %v168_v11 = vadd.f32 0.4994258, %v167_v10  ;;  %v157_v16 = vadd.f32 0.18741608, %v156_v15 }
  0xeb   :  { %v169_v13 = vmul.f32 %v168_v11, %v149_v61  ;;  %v158_v18 = vmul.f32 %v157_v16, %v149_v61 }
  0xed   :  { %v170_v14 = vadd.f32 1.0, %v169_v13  ;;  %v159_v22 = vadd.f32 1.1283791, %v158_v18 }
  0xef   :  { %262 = vrcp.f32 %v170_v14  ;;  %v182_v21 = vand.u32 2147483648, %v170_v14  ;;  %v180_v24 = vand.u32 2147483647, %v170_v14  ;;  %vm176_vm6 = vweird.f32 %v170_v14 }
  0xf0   :  { %v160_v27 = vmul.f32 %v159_v22, %v147_v59 }
  0xf1   :  { %v183_v26 = vor.u32 1.1754944e-38, %v182_v21  ;;  %vm181_vm8 = vcmp.eq.f32.partialorder %v180_v24, 8.507059e+37 }
  0xf5   :  { %v263_v17 = vpop.eup %262 }
  0xf6   :  { %v172_v19 = vmul.f32 %v263_v17, %v170_v14  ;;  %vm177_vm5 = vweird.f32 %v263_v17 }
  0xf7   :  { %vm178_vm7 = vmor %vm176_vm6, %vm177_vm5 }
  0xf8   :  { %v173_v20 = vsub.f32 1.0, %v172_v19 }
  0xfa   :  { %v174_v23 = vmul.f32 %v263_v17, %v173_v20 }
  0xfc   :  { %v175_v25 = vadd.f32 %v263_v17, %v174_v23 }
  0xfe   :  { %v179_v28 = vsel %vm178_vm7, %v263_v17, %v175_v25 }
  0xff   :  { %v184_v29 = vsel %vm181_vm8, %v183_v26, %v179_v28 }
 0x100   :  { %v185_v30 = vmul.f32 %v184_v29, %v160_v27 }
 0x102   :  { %v249_v31 = vclamps-f32 %v185_v30, 1.0 }
 0x104   :  { %v188_v33 = vadd.f32 1.0, %v249_v31 }
 0x106   :  { %v189_v34 = vmul.f32 %v188_v33, %v146_v32 }
 0x108   :  { %223 = vmatmul.f32.vlgmr.msra.gmra.mxu1 %v189_v34 }
 0x185   :  { %v224_v36 = vpop.f32.mrf.mxu1 }
 0x186   :  { %v225_v37 = vadd.f32 %v224_v36, %v206_v35 }
 0x188   :  { %v227_v38 = vadd.f32 %v225_v37, %v437_v4 }
 0x18a   :  { %228 = vst.msk [vmem:[#allocation10] sm:$0xff] %vm82_vm0, %v227_v38 }
 0x18b   :  { %239 = dma.vmem_to_hbm [thread:$0]  %s235_s3, 128, %s237_s11, [#allocation4]  }
 0x18c   :  { %390 = dma.done.wait [#allocation4], 128  }
 0x18d   :  { %391 = vsyncadd [#allocation4], 4294967168 }
 0x18e   :  { %244 = vsyncpa [#allocation3], 1 }
 0x18f   :  { %245 = vsyncpa [#allocation6], 1 }
 0x190   :  { %246 = vsyncpa [#allocation9], 1 }
 0x191   :  { %247 = vsyncpa [#allocation4], 1 }

</bundles_post_ra>
